<compile_context>
chip_gen: v5e
topology: v5e:2x2
jax: 0.10.0
libtpu: 0.0.40
codegen_flags: <defaults>
</compile_context>

<pallas_src>
import functools

import jax
import jax.numpy as jnp
from jax import lax
from jax.experimental import pallas as pl
from jax.experimental.pallas import tpu as pltpu


def _nt_xent_kernel(q_ref, k_ref, res_ref, *, inv_temp, n):
    """One row block of the NT-Xent loss.

    q_ref:   (TM, D) row block of the pre-normalized, pre-cast features (queries).
    k_ref:   (n, D)  full feature matrix, resident in VMEM (fetched once).
    res_ref: (1, 8, 128) partial sums packed into lanes 0..3 of sublane 0.
    """
    i = pl.program_id(0)
    tm = q_ref.shape[0]

    # Fold 1/temperature into the cheap (TM, D) MXU operand instead of scaling the
    # (TM, n) logits.  K is consumed as-is: no per-step cast / normalize of K.
    q_raw = q_ref[...]
    q32 = q_raw.astype(jnp.float32)
    q_op = (q32 * inv_temp).astype(q_ref.dtype)

    # logits = (q / T) @ K^T : contract the shared feature axis directly (no transpose
    # copy), low-precision operands, f32 MXU accumulation.
    logits = lax.dot_general(
        q_op, k_ref[...],
        dimension_numbers=(((1,), (1,)), ((), ())),
        preferred_element_type=jnp.float32)                       # (TM, n)

    # Row / positive-column indices as (TM,1) vs (1,n): comparisons broadcast without
    # materializing (TM, n) int32 iota tiles.
    row_g = i * tm + lax.broadcasted_iota(jnp.int32, (tm, 1), 0)  # global query row
    col = lax.broadcasted_iota(jnp.int32, (1, n), 1)
    pos_col = (row_g + n // 2) % n                                # eye rolled by n//2

    # Positive logit extracted from the matmul result itself (exactly one hit per row,
    # so the masked sum is bit-exact) -> the rank self-comparison below is exact.
    is_pos = col == pos_col                                       # 1 VPU compare pass
    pos_logit = jnp.sum(jnp.where(is_pos, logits, 0.0), axis=-1, keepdims=True)

    # Self-similarity (diagonal) logit, recomputed from the same low-precision operands
    # with a cheap (TM, D) reduction.  Only used where a few-ulp mismatch with the MXU
    # value is harmless (LSE correction, diag > pos rank correction).
    diag_logit = jnp.sum(q_op.astype(jnp.float32) * q32, axis=-1, keepdims=True)

    # Stable log-sum-exp over ALL n columns; the diagonal term is removed analytically:
    #   log(sum_{j!=i} exp(l_ij)) = m + log(sum_j exp(l_ij - m) - exp(l_ii - m)).
    m = jnp.max(logits, axis=-1, keepdims=True)
    e = jnp.exp(logits - m)                                       # 1 sub + 1 EUP pass
    s = jnp.sum(e, axis=-1, keepdims=True)
    neg = s - jnp.exp(diag_logit - m)
    loss_rows = m + jnp.log(neg) - pos_logit                      # -log(pos / neg)

    # Rank of the positive among the off-diagonal similarities (exp is monotone, so
    # compare logits).  pos_logit equals the matmul value bit-exactly, so the positive
    # column never counts as "greater"; the diagonal (which essentially always does) is
    # removed with a (TM, 1) correction.
    gt = logits > pos_logit                                       # 1 VPU compare pass
    cnt = jnp.sum(jnp.where(gt, 1.0, 0.0), axis=-1, keepdims=True)
    rank = cnt - jnp.where(diag_logit > pos_logit, 1.0, 0.0)

    part_loss = jnp.sum(loss_rows)
    part_top1 = jnp.sum(jnp.where(rank == 0.0, 1.0, 0.0))
    part_top5 = jnp.sum(jnp.where(rank < 5.0, 1.0, 0.0))
    part_rank = jnp.sum(rank)

    # Pack the 4 partial sums into lanes 0..3 of this step's output tile.
    lane = lax.broadcasted_iota(jnp.int32, res_ref.shape, 2)
    res_ref[...] = (jnp.where(lane == 0, part_loss, 0.0)
                    + jnp.where(lane == 1, part_top1, 0.0)
                    + jnp.where(lane == 2, part_top5, 0.0)
                    + jnp.where(lane == 3, part_rank, 0.0))


def _pick_block_rows(n, target, cap_rows):
    """Row tile: divides n, multiple of 8, fits the VMEM cap, prefers MXU-aligned
    (256- then 128-) multiples, and keeps >= 2 grid steps when possible (megacore)."""
    divs = [t for t in range(8, n + 1, 8) if n % t == 0]
    if not divs:
        return n                          # degenerate n (not a multiple of 8)
    limit = max(8, min(target, cap_rows))
    half = n // 2
    if half >= 8 and any(t <= min(limit, half) for t in divs):
        limit = min(limit, half)          # guarantee >= 2 grid steps
    ok = [t for t in divs if t <= limit] or [divs[0]]
    for align in (256, 128):
        aligned = [t for t in ok if t % align == 0]
        if aligned:
            return max(aligned)
    return max(ok)


def nt_xent_loss(out_1, out_2, temperature, use_unnormalized_feats=False,
                 *, block_rows=None, compute_dtype=jnp.bfloat16):
    """Pallas NT-Xent loss.  Returns (loss, logging_metrics) like the nn.Module."""
    assert out_1.ndim == 2 and out_1.shape == out_2.shape, "views must be [B, D] and equal"
    B, D = out_1.shape
    n = 2 * B
    inv_temp = 1.0 / float(temperature)

    # --- all K-side preprocessing happens once here, not once per grid step ---------
    feats = jnp.concatenate([out_1, out_2], axis=0).astype(jnp.float32)       # [n, D]
    if use_unnormalized_feats:
        # cosine similarity == L2-normalize rows (f32) + plain matmul
        feats = feats * lax.rsqrt(jnp.sum(feats * feats, axis=-1, keepdims=True))
    feats = feats.astype(compute_dtype)       # single low-precision copy (1/2 VMEM+DMA)
    itemsize = jnp.dtype(compute_dtype).itemsize

    try:
        vmem_cap = int(pltpu.get_tpu_info().vmem_capacity_bytes)
    except Exception:
        vmem_cap = 64 * 2**20                 # conservative default (v7x per-TC VMEM)

    if block_rows is None:
        block_rows = 128 if vmem_cap <= 96 * 2**20 else 256      # v7x vs v5e/v6e

    # VMEM budget: resident K (<=2 bufs) + double-buffered Q block + ~6 live (tm, n)
    # f32 temporaries + output tiles; cap tm so everything fits with headroom.
    fixed = 2 * n * D * itemsize + 2 * 8 * 128 * 4 + (1 << 20)
    per_row = 2 * D * itemsize + 6 * n * 4
    cap_rows = max(8, (int(0.75 * vmem_cap) - fixed) // per_row)
    tm = _pick_block_rows(n, block_rows, cap_rows)
    grid = (n // tm,)

    vmem_limit = int(min(max(fixed + tm * per_row, 16 * 2**20), int(0.90 * vmem_cap)))

    kernel = functools.partial(_nt_xent_kernel, inv_temp=inv_temp, n=n)

    def run(single_buffer_k):
        # K's index_map is constant -> it is only DMA'd once; single-buffering halves
        # its VMEM residency (matters for large n on v7x's 64 MiB/TC).
        k_kwargs = {"pipeline_mode": pl.Buffered(1)} if single_buffer_k else {}
        return pl.pallas_call(
            kernel,
            out_shape=jax.ShapeDtypeStruct((grid[0], 8, 128), jnp.float32),
            grid=grid,
            in_specs=[
                pl.BlockSpec((tm, D), lambda i: (i, 0)),               # Q row block
                pl.BlockSpec((n, D), lambda i: (0, 0), **k_kwargs),    # resident K
            ],
            out_specs=pl.BlockSpec((1, 8, 128), lambda i: (i, 0, 0)),
            compiler_params=pltpu.CompilerParams(
                dimension_semantics=("parallel",),
                vmem_limit_bytes=vmem_limit,
            ),
            cost_estimate=pl.CostEstimate(
                flops=2 * n * n * D,
                transcendentals=n * n,
                # K is resident (read once), Q blocks read once, small partials out.
                bytes_accessed=2 * n * D * itemsize + grid[0] * 8 * 128 * 4,
            ),
        )(feats, feats)

    try:
        partials = run(True)
    except Exception:
        # Older JAX without pipeline_mode / Buffered(1): default double buffering.
        partials = run(False)

    sums = jnp.sum(partials[:, 0, :], axis=0)                      # lane-packed sums
    inv_n = 1.0 / n
    loss = sums[0] * inv_n
    logging_metrics = {
        "acc_top1": sums[1] * inv_n,
        "acc_top5": sums[2] * inv_n,
        "acc_mean_pos": 1.0 + sums[3] * inv_n,
    }
    return loss, logging_metrics


def _reference(out_1, out_2, temperature, use_unnormalized_feats=False,
               compute_dtype=jnp.float32):
    """Pure-JAX reference matching the PyTorch forward.

    With compute_dtype=bfloat16 it mirrors the kernel's operand rounding (bf16 feats,
    1/T folded into the bf16 LHS) so the masking / LSE / rank logic can be checked
    tightly; with float32 it is the plain PyTorch math.
    """
    out = jnp.concatenate([out_1, out_2], axis=0).astype(jnp.float32)
    n = out.shape[0]
    if use_unnormalized_feats:
        out = out * lax.rsqrt(jnp.sum(out * out, axis=-1, keepdims=True))
    inv_t = 1.0 / float(temperature)
    if jnp.dtype(compute_dtype) == jnp.dtype(jnp.float32):
        logits = jnp.dot(out, out.T, precision=lax.Precision.HIGHEST,
                         preferred_element_type=jnp.float32) * inv_t
    else:
        o = out.astype(compute_dtype)
        q_op = (o.astype(jnp.float32) * inv_t).astype(compute_dtype)
        logits = jnp.dot(q_op, o.T, preferred_element_type=jnp.float32)
    eye = jnp.eye(n, dtype=bool)
    pos_mask = jnp.roll(eye, n // 2, axis=0)
    pos = jnp.sum(jnp.where(pos_mask, logits, 0.0), axis=-1)
    neg_logits = jnp.where(eye, -jnp.inf, logits)
    m = jnp.max(neg_logits, axis=-1)
    neg = jnp.sum(jnp.exp(neg_logits - m[:, None]), axis=-1)
    loss = jnp.mean(m + jnp.log(neg) - pos)
    rank = jnp.sum(((logits > pos[:, None]) & ~eye).astype(jnp.float32), axis=-1)
    return loss, {
        "acc_top1": jnp.mean((rank == 0).astype(jnp.float32)),
        "acc_top5": jnp.mean((rank < 5).astype(jnp.float32)),
        "acc_mean_pos": 1.0 + jnp.mean(rank),
    }


if __name__ == "__main__":
    B, D = 8, 128
    temperature = 0.5

    key = jax.random.PRNGKey(0)
    k1, k2 = jax.random.split(key)
    raw_1 = jax.random.normal(k1, (B, D), dtype=jnp.float32)
    raw_2 = jax.random.normal(k2, (B, D), dtype=jnp.float32)
    # Module expects L2-normalized features on the default path.
    out_1 = raw_1 / jnp.linalg.norm(raw_1, axis=-1, keepdims=True)
    out_2 = raw_2 / jnp.linalg.norm(raw_2, axis=-1, keepdims=True)

    # Default (pre-normalized) path: n=16 -> tm=8, grid=(2,).
    loss, metrics = nt_xent_loss(out_1, out_2, temperature)
    loss = jax.block_until_ready(loss)
    metrics = {k: jax.block_until_ready(v) for k, v in metrics.items()}

    # 1) Matched reference (same bf16 operand rounding) — validates masking/LSE/rank.
    ref_loss_b, ref_metrics_b = _reference(out_1, out_2, temperature,
                                           compute_dtype=jnp.bfloat16)
    assert jnp.allclose(loss, ref_loss_b, rtol=1e-3, atol=1e-3), (loss, ref_loss_b)
    for name in ref_metrics_b:
        assert jnp.allclose(metrics[name], ref_metrics_b[name], rtol=1e-3, atol=1e-3), name

    # 2) Full-f32 reference (PyTorch math) — loose tolerance for the bf16 MXU matmul.
    ref_loss_f, _ = _reference(out_1, out_2, temperature, compute_dtype=jnp.float32)
    assert jnp.allclose(loss, ref_loss_f, rtol=3e-2, atol=3e-2), (loss, ref_loss_f)

    # 3) use_unnormalized_feats path (cosine normalization hoisted to the wrapper).
    loss_u, metrics_u = nt_xent_loss(raw_1, raw_2, temperature,
                                     use_unnormalized_feats=True)
    loss_u = jax.block_until_ready(loss_u)
    metrics_u = {k: jax.block_until_ready(v) for k, v in metrics_u.items()}
    ref_loss_u, ref_metrics_u = _reference(raw_1, raw_2, temperature,
                                           use_unnormalized_feats=True,
                                           compute_dtype=jnp.bfloat16)
    assert jnp.allclose(loss_u, ref_loss_u, rtol=1e-3, atol=1e-3), (loss_u, ref_loss_u)
    for name in ref_metrics_u:
        assert jnp.allclose(metrics_u[name], ref_metrics_u[name], rtol=1e-3, atol=1e-3), name

    print("KERNEL_OK")
</pallas_src>

<mosaic_0001>
module attributes {stable_mosaic.version = 11 : i64} {
  func.func @_nt_xent_kernel(%arg0: i32, %arg1: memref<8x128xbf16, #tpu.memory_space<vmem>>, %arg2: memref<16x128xbf16, #tpu.memory_space<vmem>>, %arg3: memref<1x8x128xf32, #tpu.memory_space<vmem>>) attributes {dimension_semantics = [#tpu.dimension_semantics<parallel>], iteration_bounds = array<i64: 2>, scalar_prefetch = 0 : i64, scratch_operands = 0 : i64, tpu.core_type = #tpu.core_type<tc>, window_params = [{transform_indices = @transform_0, window_bounds = array<i64: 8, 128>}, {pipeline_mode = #tpu.pipeline_mode<synchronous>, transform_indices = @transform_1, window_bounds = array<i64: 16, 128>}, {transform_indices = @transform_2, window_bounds = array<i64: 1, 8, 128>}]} {
    %c0 = arith.constant 0 : index
    %c0_0 = arith.constant 0 : index
    %0 = vector.load %arg1[%c0, %c0_0] : memref<8x128xbf16, #tpu.memory_space<vmem>>, vector<8x128xbf16>
    %1 = arith.extf %0 : vector<8x128xbf16> to vector<8x128xf32>
    %cst = arith.constant 2.000000e+00 : f32
    %2 = vector.broadcast %cst : f32 to vector<8x128xf32>
    %3 = arith.mulf %1, %2 : vector<8x128xf32>
    %4 = arith.truncf %3 : vector<8x128xf32> to vector<8x128xbf16>
    %c0_1 = arith.constant 0 : index
    %c0_2 = arith.constant 0 : index
    %5 = vector.load %arg2[%c0_1, %c0_2] : memref<16x128xbf16, #tpu.memory_space<vmem>>, vector<16x128xbf16>
    %cst_3 = arith.constant dense<0.000000e+00> : vector<8x16xf32>
    %6 = tpu.matmul %4, %5, %cst_3 {dimension_numbers = #tpu.dot_dimension_numbers<[1], [1], [0], [0], [0, 0, 1, 0], [], []>} : vector<8x128xbf16>, vector<16x128xbf16>, vector<8x16xf32> -> vector<8x16xf32>
    %c8_i32 = arith.constant 8 : i32
    %7 = arith.muli %arg0, %c8_i32 : i32
    %8 = tpu.iota {dimensions = array<i32: 0>} : vector<8x1xi32>
    %9 = vector.broadcast %7 : i32 to vector<8x1xi32>
    %10 = arith.addi %9, %8 : vector<8x1xi32>
    %11 = tpu.iota {dimensions = array<i32: 1>} : vector<1x16xi32>
    %c8_i32_4 = arith.constant 8 : i32
    %12 = vector.broadcast %c8_i32_4 : i32 to vector<8x1xi32>
    %13 = arith.addi %10, %12 : vector<8x1xi32>
    %c16_i32 = arith.constant 16 : i32
    %c0_i32 = arith.constant 0 : i32
    %14 = arith.cmpi eq, %c16_i32, %c0_i32 : i32
    %c1_i32 = arith.constant 1 : i32
    %15 = arith.select %14, %c1_i32, %c16_i32 : i32
    %16 = vector.broadcast %15 : i32 to vector<8x1xi32>
    %17 = arith.remsi %13, %16 : vector<8x1xi32>
    %c0_i32_5 = arith.constant 0 : i32
    %18 = vector.broadcast %c0_i32_5 : i32 to vector<8x1xi32>
    %19 = arith.cmpi ne, %17, %18 : vector<8x1xi32>
    %c0_i32_6 = arith.constant 0 : i32
    %20 = vector.broadcast %c0_i32_6 : i32 to vector<8x1xi32>
    %21 = arith.cmpi slt, %17, %20 : vector<8x1xi32>
    %c0_i32_7 = arith.constant 0 : i32
    %22 = arith.cmpi slt, %15, %c0_i32_7 : i32
    %23 = vector.broadcast %22 : i1 to vector<8x1xi1>
    %24 = vector.broadcast %23 : vector<8x1xi1> to vector<8x1xi1>
    %25 = arith.xori %21, %24 : vector<8x1xi1>
    %26 = arith.andi %25, %19 : vector<8x1xi1>
    %27 = vector.broadcast %15 : i32 to vector<8x1xi32>
    %28 = arith.addi %17, %27 : vector<8x1xi32>
    %29 = arith.select %26, %28, %17 : vector<8x1xi1>, vector<8x1xi32>
    %30 = vector.broadcast %11 : vector<1x16xi32> to vector<8x16xi32>
    %31 = vector.broadcast %29 : vector<8x1xi32> to vector<8x16xi32>
    %32 = arith.cmpi eq, %30, %31 : vector<8x16xi32>
    %cst_8 = arith.constant 0.000000e+00 : f32
    %33 = vector.broadcast %cst_8 : f32 to vector<8x16xf32>
    %34 = arith.select %32, %6, %33 : vector<8x16xi1>, vector<8x16xf32>
    %cst_9 = arith.constant dense<0.000000e+00> : vector<8xf32>
    %35 = vector.multi_reduction <add>, %34, %cst_9 [1] : vector<8x16xf32> to vector<8xf32>
    %36 = vector.shape_cast %35 : vector<8xf32> to vector<8x1xf32>
    %37 = arith.extf %4 : vector<8x128xbf16> to vector<8x128xf32>
    %38 = arith.mulf %37, %1 : vector<8x128xf32>
    %cst_10 = arith.constant dense<0.000000e+00> : vector<8xf32>
    %39 = vector.multi_reduction <add>, %38, %cst_10 [1] : vector<8x128xf32> to vector<8xf32>
    %40 = vector.shape_cast %39 : vector<8xf32> to vector<8x1xf32>
    %cst_11 = arith.constant dense<0xFF800000> : vector<8xf32>
    %41 = vector.multi_reduction <maximumf>, %6, %cst_11 [1] : vector<8x16xf32> to vector<8xf32>
    %42 = vector.shape_cast %41 : vector<8xf32> to vector<8x1xf32>
    %43 = vector.broadcast %42 : vector<8x1xf32> to vector<8x16xf32>
    %44 = arith.subf %6, %43 : vector<8x16xf32>
    %45 = math.exp %44 : vector<8x16xf32>
    %cst_12 = arith.constant dense<0.000000e+00> : vector<8xf32>
    %46 = vector.multi_reduction <add>, %45, %cst_12 [1] : vector<8x16xf32> to vector<8xf32>
    %47 = vector.shape_cast %46 : vector<8xf32> to vector<8x1xf32>
    %48 = arith.subf %40, %42 : vector<8x1xf32>
    %49 = math.exp %48 : vector<8x1xf32>
    %50 = arith.subf %47, %49 : vector<8x1xf32>
    %51 = math.log %50 : vector<8x1xf32>
    %52 = arith.addf %42, %51 : vector<8x1xf32>
    %53 = arith.subf %52, %36 : vector<8x1xf32>
    %54 = vector.broadcast %36 : vector<8x1xf32> to vector<8x16xf32>
    %55 = arith.cmpf ogt, %6, %54 : vector<8x16xf32>
    %cst_13 = arith.constant 1.000000e+00 : f32
    %cst_14 = arith.constant 0.000000e+00 : f32
    %56 = vector.broadcast %cst_13 : f32 to vector<8x16xf32>
    %57 = vector.broadcast %cst_14 : f32 to vector<8x16xf32>
    %58 = arith.select %55, %56, %57 : vector<8x16xi1>, vector<8x16xf32>
    %cst_15 = arith.constant dense<0.000000e+00> : vector<8xf32>
    %59 = vector.multi_reduction <add>, %58, %cst_15 [1] : vector<8x16xf32> to vector<8xf32>
    %60 = vector.shape_cast %59 : vector<8xf32> to vector<8x1xf32>
    %61 = arith.cmpf ogt, %40, %36 : vector<8x1xf32>
    %cst_16 = arith.constant 1.000000e+00 : f32
    %cst_17 = arith.constant 0.000000e+00 : f32
    %62 = vector.broadcast %cst_16 : f32 to vector<8x1xf32>
    %63 = vector.broadcast %cst_17 : f32 to vector<8x1xf32>
    %64 = arith.select %61, %62, %63 : vector<8x1xi1>, vector<8x1xf32>
    %65 = arith.subf %60, %64 : vector<8x1xf32>
    %66 = vector.shape_cast %53 : vector<8x1xf32> to vector<1x8x1xf32>
    %cst_18 = arith.constant dense<0.000000e+00> : vector<1xf32>
    %67 = vector.multi_reduction <add>, %66, %cst_18 [1, 2] : vector<1x8x1xf32> to vector<1xf32>
    %68 = vector.shape_cast %67 : vector<1xf32> to vector<1x1x1xf32>
    %69 = vector.extract %68[0, 0, 0] : f32 from vector<1x1x1xf32>
    %cst_19 = arith.constant 0.000000e+00 : f32
    %70 = vector.broadcast %cst_19 : f32 to vector<8x1xf32>
    %71 = arith.cmpf oeq, %65, %70 : vector<8x1xf32>
    %cst_20 = arith.constant 1.000000e+00 : f32
    %cst_21 = arith.constant 0.000000e+00 : f32
    %72 = vector.broadcast %cst_20 : f32 to vector<8x1xf32>
    %73 = vector.broadcast %cst_21 : f32 to vector<8x1xf32>
    %74 = arith.select %71, %72, %73 : vector<8x1xi1>, vector<8x1xf32>
    %75 = vector.shape_cast %74 : vector<8x1xf32> to vector<1x8x1xf32>
    %cst_22 = arith.constant dense<0.000000e+00> : vector<1xf32>
    %76 = vector.multi_reduction <add>, %75, %cst_22 [1, 2] : vector<1x8x1xf32> to vector<1xf32>
    %77 = vector.shape_cast %76 : vector<1xf32> to vector<1x1x1xf32>
    %78 = vector.extract %77[0, 0, 0] : f32 from vector<1x1x1xf32>
    %cst_23 = arith.constant 5.000000e+00 : f32
    %79 = vector.broadcast %cst_23 : f32 to vector<8x1xf32>
    %80 = arith.cmpf olt, %65, %79 : vector<8x1xf32>
    %cst_24 = arith.constant 1.000000e+00 : f32
    %cst_25 = arith.constant 0.000000e+00 : f32
    %81 = vector.broadcast %cst_24 : f32 to vector<8x1xf32>
    %82 = vector.broadcast %cst_25 : f32 to vector<8x1xf32>
    %83 = arith.select %80, %81, %82 : vector<8x1xi1>, vector<8x1xf32>
    %84 = vector.shape_cast %83 : vector<8x1xf32> to vector<1x8x1xf32>
    %cst_26 = arith.constant dense<0.000000e+00> : vector<1xf32>
    %85 = vector.multi_reduction <add>, %84, %cst_26 [1, 2] : vector<1x8x1xf32> to vector<1xf32>
    %86 = vector.shape_cast %85 : vector<1xf32> to vector<1x1x1xf32>
    %87 = vector.extract %86[0, 0, 0] : f32 from vector<1x1x1xf32>
    %88 = vector.shape_cast %65 : vector<8x1xf32> to vector<1x8x1xf32>
    %cst_27 = arith.constant dense<0.000000e+00> : vector<1xf32>
    %89 = vector.multi_reduction <add>, %88, %cst_27 [1, 2] : vector<1x8x1xf32> to vector<1xf32>
    %90 = vector.shape_cast %89 : vector<1xf32> to vector<1x1x1xf32>
    %91 = vector.extract %90[0, 0, 0] : f32 from vector<1x1x1xf32>
    %92 = tpu.iota {dimensions = array<i32: 2>} : vector<1x8x128xi32>
    %c0_i32_28 = arith.constant 0 : i32
    %93 = vector.broadcast %c0_i32_28 : i32 to vector<1x8x128xi32>
    %94 = arith.cmpi eq, %92, %93 : vector<1x8x128xi32>
    %cst_29 = arith.constant 0.000000e+00 : f32
    %95 = vector.broadcast %69 : f32 to vector<1x8x128xf32>
    %96 = vector.broadcast %cst_29 : f32 to vector<1x8x128xf32>
    %97 = arith.select %94, %95, %96 : vector<1x8x128xi1>, vector<1x8x128xf32>
    %c1_i32_30 = arith.constant 1 : i32
    %98 = vector.broadcast %c1_i32_30 : i32 to vector<1x8x128xi32>
    %99 = arith.cmpi eq, %92, %98 : vector<1x8x128xi32>
    %cst_31 = arith.constant 0.000000e+00 : f32
    %100 = vector.broadcast %78 : f32 to vector<1x8x128xf32>
    %101 = vector.broadcast %cst_31 : f32 to vector<1x8x128xf32>
    %102 = arith.select %99, %100, %101 : vector<1x8x128xi1>, vector<1x8x128xf32>
    %103 = arith.addf %97, %102 : vector<1x8x128xf32>
    %c2_i32 = arith.constant 2 : i32
    %104 = vector.broadcast %c2_i32 : i32 to vector<1x8x128xi32>
    %105 = arith.cmpi eq, %92, %104 : vector<1x8x128xi32>
    %cst_32 = arith.constant 0.000000e+00 : f32
    %106 = vector.broadcast %87 : f32 to vector<1x8x128xf32>
    %107 = vector.broadcast %cst_32 : f32 to vector<1x8x128xf32>
    %108 = arith.select %105, %106, %107 : vector<1x8x128xi1>, vector<1x8x128xf32>
    %109 = arith.addf %103, %108 : vector<1x8x128xf32>
    %c3_i32 = arith.constant 3 : i32
    %110 = vector.broadcast %c3_i32 : i32 to vector<1x8x128xi32>
    %111 = arith.cmpi eq, %92, %110 : vector<1x8x128xi32>
    %cst_33 = arith.constant 0.000000e+00 : f32
    %112 = vector.broadcast %91 : f32 to vector<1x8x128xf32>
    %113 = vector.broadcast %cst_33 : f32 to vector<1x8x128xf32>
    %114 = arith.select %111, %112, %113 : vector<1x8x128xi1>, vector<1x8x128xf32>
    %115 = arith.addf %109, %114 : vector<1x8x128xf32>
    %c0_34 = arith.constant 0 : index
    %c0_35 = arith.constant 0 : index
    %c0_36 = arith.constant 0 : index
    %116 = vector.load %arg3[%c0_34, %c0_35, %c0_36] : memref<1x8x128xf32, #tpu.memory_space<vmem>>, vector<1x8x128xf32>
    tpu.vector_store %arg3[%c0_34, %c0_35, %c0_36], %115 {strides = array<i32>} : memref<1x8x128xf32, #tpu.memory_space<vmem>>, vector<1x8x128xf32>,
    return
  }
  func.func @transform_0(%arg0: i32) -> (i32, i32) {
    %c0_i32 = arith.constant 0 : i32
    %c0_i32_0 = arith.constant 0 : i32
    return %arg0, %c0_i32 : i32, i32
  }
  func.func @transform_1(%arg0: i32) -> (i32, i32) {
    %c0_i32 = arith.constant 0 : i32
    %c0_i32_0 = arith.constant 0 : i32
    %c0_i32_1 = arith.constant 0 : i32
    return %c0_i32, %c0_i32_0 : i32, i32
  }
  func.func @transform_2(%arg0: i32) -> (i32, i32, i32) {
    %c0_i32 = arith.constant 0 : i32
    %c0_i32_0 = arith.constant 0 : i32
    %c0_i32_1 = arith.constant 0 : i32
    return %arg0, %c0_i32, %c0_i32_0 : i32, i32, i32
  }
}

module attributes {stable_mosaic.version = 11 : i64} {
  func.func @_nt_xent_kernel(%arg0: i32, %arg1: memref<8x128xbf16, #tpu.memory_space<vmem>>, %arg2: memref<16x128xbf16, #tpu.memory_space<vmem>>, %arg3: memref<1x8x128xf32, #tpu.memory_space<vmem>>) attributes {dimension_semantics = [#tpu.dimension_semantics<parallel>], iteration_bounds = array<i64: 2>, scalar_prefetch = 0 : i64, scratch_operands = 0 : i64, tpu.core_type = #tpu.core_type<tc>, window_params = [{transform_indices = @transform_0, window_bounds = array<i64: 8, 128>}, {pipeline_mode = #tpu.pipeline_mode<synchronous>, transform_indices = @transform_1, window_bounds = array<i64: 16, 128>}, {transform_indices = @transform_2, window_bounds = array<i64: 1, 8, 128>}]} {
    %c0 = arith.constant 0 : index
    %c0_0 = arith.constant 0 : index
    %0 = vector.load %arg1[%c0, %c0_0] : memref<8x128xbf16, #tpu.memory_space<vmem>>, vector<8x128xbf16>
    %1 = arith.extf %0 : vector<8x128xbf16> to vector<8x128xf32>
    %cst = arith.constant 2.000000e+00 : f32
    %2 = vector.broadcast %cst : f32 to vector<8x128xf32>
    %3 = arith.mulf %1, %2 : vector<8x128xf32>
    %4 = arith.truncf %3 : vector<8x128xf32> to vector<8x128xbf16>
    %c0_1 = arith.constant 0 : index
    %c0_2 = arith.constant 0 : index
    %5 = vector.load %arg2[%c0_1, %c0_2] : memref<16x128xbf16, #tpu.memory_space<vmem>>, vector<16x128xbf16>
    %cst_3 = arith.constant dense<0.000000e+00> : vector<8x16xf32>
    %6 = tpu.matmul %4, %5, %cst_3 {dimension_numbers = #tpu.dot_dimension_numbers<[1], [1], [0], [0], [0, 0, 1, 0], [], []>} : vector<8x128xbf16>, vector<16x128xbf16>, vector<8x16xf32> -> vector<8x16xf32>
    %c8_i32 = arith.constant 8 : i32
    %7 = arith.muli %arg0, %c8_i32 : i32
    %8 = tpu.iota {dimensions = array<i32: 0>} : vector<8x1xi32>
    %9 = vector.broadcast %7 : i32 to vector<8x1xi32>
    %10 = arith.addi %9, %8 : vector<8x1xi32>
    %11 = tpu.iota {dimensions = array<i32: 1>} : vector<1x16xi32>
    %c8_i32_4 = arith.constant 8 : i32
    %12 = vector.broadcast %c8_i32_4 : i32 to vector<8x1xi32>
    %13 = arith.addi %10, %12 : vector<8x1xi32>
    %c16_i32 = arith.constant 16 : i32
    %c0_i32 = arith.constant 0 : i32
    %14 = arith.cmpi eq, %c16_i32, %c0_i32 : i32
    %c1_i32 = arith.constant 1 : i32
    %15 = arith.select %14, %c1_i32, %c16_i32 : i32
    %16 = vector.broadcast %15 : i32 to vector<8x1xi32>
    %17 = arith.remsi %13, %16 : vector<8x1xi32>
    %c0_i32_5 = arith.constant 0 : i32
    %18 = vector.broadcast %c0_i32_5 : i32 to vector<8x1xi32>
    %19 = arith.cmpi ne, %17, %18 : vector<8x1xi32>
    %c0_i32_6 = arith.constant 0 : i32
    %20 = vector.broadcast %c0_i32_6 : i32 to vector<8x1xi32>
    %21 = arith.cmpi slt, %17, %20 : vector<8x1xi32>
    %c0_i32_7 = arith.constant 0 : i32
    %22 = arith.cmpi slt, %15, %c0_i32_7 : i32
    %23 = vector.broadcast %22 : i1 to vector<8x1xi1>
    %24 = vector.broadcast %23 : vector<8x1xi1> to vector<8x1xi1>
    %25 = arith.xori %21, %24 : vector<8x1xi1>
    %26 = arith.andi %25, %19 : vector<8x1xi1>
    %27 = vector.broadcast %15 : i32 to vector<8x1xi32>
    %28 = arith.addi %17, %27 : vector<8x1xi32>
    %29 = arith.select %26, %28, %17 : vector<8x1xi1>, vector<8x1xi32>
    %30 = vector.broadcast %11 : vector<1x16xi32> to vector<8x16xi32>
    %31 = vector.broadcast %29 : vector<8x1xi32> to vector<8x16xi32>
    %32 = arith.cmpi eq, %30, %31 : vector<8x16xi32>
    %cst_8 = arith.constant 0.000000e+00 : f32
    %33 = vector.broadcast %cst_8 : f32 to vector<8x16xf32>
    %34 = arith.select %32, %6, %33 : vector<8x16xi1>, vector<8x16xf32>
    %cst_9 = arith.constant dense<0.000000e+00> : vector<8xf32>
    %35 = vector.multi_reduction <add>, %34, %cst_9 [1] : vector<8x16xf32> to vector<8xf32>
    %36 = vector.shape_cast %35 : vector<8xf32> to vector<8x1xf32>
    %37 = arith.extf %4 : vector<8x128xbf16> to vector<8x128xf32>
    %38 = arith.mulf %37, %1 : vector<8x128xf32>
    %cst_10 = arith.constant dense<0.000000e+00> : vector<8xf32>
    %39 = vector.multi_reduction <add>, %38, %cst_10 [1] : vector<8x128xf32> to vector<8xf32>
    %40 = vector.shape_cast %39 : vector<8xf32> to vector<8x1xf32>
    %cst_11 = arith.constant dense<0xFF800000> : vector<8xf32>
    %41 = vector.multi_reduction <maximumf>, %6, %cst_11 [1] : vector<8x16xf32> to vector<8xf32>
    %42 = vector.shape_cast %41 : vector<8xf32> to vector<8x1xf32>
    %43 = vector.broadcast %42 : vector<8x1xf32> to vector<8x16xf32>
    %44 = arith.subf %6, %43 : vector<8x16xf32>
    %45 = math.exp %44 : vector<8x16xf32>
    %cst_12 = arith.constant dense<0.000000e+00> : vector<8xf32>
    %46 = vector.multi_reduction <add>, %45, %cst_12 [1] : vector<8x16xf32> to vector<8xf32>
    %47 = vector.shape_cast %46 : vector<8xf32> to vector<8x1xf32>
    %48 = arith.subf %40, %42 : vector<8x1xf32>
    %49 = math.exp %48 : vector<8x1xf32>
    %50 = arith.subf %47, %49 : vector<8x1xf32>
    %51 = math.log %50 : vector<8x1xf32>
    %52 = arith.addf %42, %51 : vector<8x1xf32>
    %53 = arith.subf %52, %36 : vector<8x1xf32>
    %54 = vector.broadcast %36 : vector<8x1xf32> to vector<8x16xf32>
    %55 = arith.cmpf ogt, %6, %54 : vector<8x16xf32>
    %cst_13 = arith.constant 1.000000e+00 : f32
    %cst_14 = arith.constant 0.000000e+00 : f32
    %56 = vector.broadcast %cst_13 : f32 to vector<8x16xf32>
    %57 = vector.broadcast %cst_14 : f32 to vector<8x16xf32>
    %58 = arith.select %55, %56, %57 : vector<8x16xi1>, vector<8x16xf32>
    %cst_15 = arith.constant dense<0.000000e+00> : vector<8xf32>
    %59 = vector.multi_reduction <add>, %58, %cst_15 [1] : vector<8x16xf32> to vector<8xf32>
    %60 = vector.shape_cast %59 : vector<8xf32> to vector<8x1xf32>
    %61 = arith.cmpf ogt, %40, %36 : vector<8x1xf32>
    %cst_16 = arith.constant 1.000000e+00 : f32
    %cst_17 = arith.constant 0.000000e+00 : f32
    %62 = vector.broadcast %cst_16 : f32 to vector<8x1xf32>
    %63 = vector.broadcast %cst_17 : f32 to vector<8x1xf32>
    %64 = arith.select %61, %62, %63 : vector<8x1xi1>, vector<8x1xf32>
    %65 = arith.subf %60, %64 : vector<8x1xf32>
    %66 = vector.shape_cast %53 : vector<8x1xf32> to vector<1x8x1xf32>
    %cst_18 = arith.constant dense<0.000000e+00> : vector<1xf32>
    %67 = vector.multi_reduction <add>, %66, %cst_18 [1, 2] : vector<1x8x1xf32> to vector<1xf32>
    %68 = vector.shape_cast %67 : vector<1xf32> to vector<1x1x1xf32>
    %69 = vector.extract %68[0, 0, 0] : f32 from vector<1x1x1xf32>
    %cst_19 = arith.constant 0.000000e+00 : f32
    %70 = vector.broadcast %cst_19 : f32 to vector<8x1xf32>
    %71 = arith.cmpf oeq, %65, %70 : vector<8x1xf32>
    %cst_20 = arith.constant 1.000000e+00 : f32
    %cst_21 = arith.constant 0.000000e+00 : f32
    %72 = vector.broadcast %cst_20 : f32 to vector<8x1xf32>
    %73 = vector.broadcast %cst_21 : f32 to vector<8x1xf32>
    %74 = arith.select %71, %72, %73 : vector<8x1xi1>, vector<8x1xf32>
    %75 = vector.shape_cast %74 : vector<8x1xf32> to vector<1x8x1xf32>
    %cst_22 = arith.constant dense<0.000000e+00> : vector<1xf32>
    %76 = vector.multi_reduction <add>, %75, %cst_22 [1, 2] : vector<1x8x1xf32> to vector<1xf32>
    %77 = vector.shape_cast %76 : vector<1xf32> to vector<1x1x1xf32>
    %78 = vector.extract %77[0, 0, 0] : f32 from vector<1x1x1xf32>
    %cst_23 = arith.constant 5.000000e+00 : f32
    %79 = vector.broadcast %cst_23 : f32 to vector<8x1xf32>
    %80 = arith.cmpf olt, %65, %79 : vector<8x1xf32>
    %cst_24 = arith.constant 1.000000e+00 : f32
    %cst_25 = arith.constant 0.000000e+00 : f32
    %81 = vector.broadcast %cst_24 : f32 to vector<8x1xf32>
    %82 = vector.broadcast %cst_25 : f32 to vector<8x1xf32>
    %83 = arith.select %80, %81, %82 : vector<8x1xi1>, vector<8x1xf32>
    %84 = vector.shape_cast %83 : vector<8x1xf32> to vector<1x8x1xf32>
    %cst_26 = arith.constant dense<0.000000e+00> : vector<1xf32>
    %85 = vector.multi_reduction <add>, %84, %cst_26 [1, 2] : vector<1x8x1xf32> to vector<1xf32>
    %86 = vector.shape_cast %85 : vector<1xf32> to vector<1x1x1xf32>
    %87 = vector.extract %86[0, 0, 0] : f32 from vector<1x1x1xf32>
    %88 = vector.shape_cast %65 : vector<8x1xf32> to vector<1x8x1xf32>
    %cst_27 = arith.constant dense<0.000000e+00> : vector<1xf32>
    %89 = vector.multi_reduction <add>, %88, %cst_27 [1, 2] : vector<1x8x1xf32> to vector<1xf32>
    %90 = vector.shape_cast %89 : vector<1xf32> to vector<1x1x1xf32>
    %91 = vector.extract %90[0, 0, 0] : f32 from vector<1x1x1xf32>
    %92 = tpu.iota {dimensions = array<i32: 2>} : vector<1x8x128xi32>
    %c0_i32_28 = arith.constant 0 : i32
    %93 = vector.broadcast %c0_i32_28 : i32 to vector<1x8x128xi32>
    %94 = arith.cmpi eq, %92, %93 : vector<1x8x128xi32>
    %cst_29 = arith.constant 0.000000e+00 : f32
    %95 = vector.broadcast %69 : f32 to vector<1x8x128xf32>
    %96 = vector.broadcast %cst_29 : f32 to vector<1x8x128xf32>
    %97 = arith.select %94, %95, %96 : vector<1x8x128xi1>, vector<1x8x128xf32>
    %c1_i32_30 = arith.constant 1 : i32
    %98 = vector.broadcast %c1_i32_30 : i32 to vector<1x8x128xi32>
    %99 = arith.cmpi eq, %92, %98 : vector<1x8x128xi32>
    %cst_31 = arith.constant 0.000000e+00 : f32
    %100 = vector.broadcast %78 : f32 to vector<1x8x128xf32>
    %101 = vector.broadcast %cst_31 : f32 to vector<1x8x128xf32>
    %102 = arith.select %99, %100, %101 : vector<1x8x128xi1>, vector<1x8x128xf32>
    %103 = arith.addf %97, %102 : vector<1x8x128xf32>
    %c2_i32 = arith.constant 2 : i32
    %104 = vector.broadcast %c2_i32 : i32 to vector<1x8x128xi32>
    %105 = arith.cmpi eq, %92, %104 : vector<1x8x128xi32>
    %cst_32 = arith.constant 0.000000e+00 : f32
    %106 = vector.broadcast %87 : f32 to vector<1x8x128xf32>
    %107 = vector.broadcast %cst_32 : f32 to vector<1x8x128xf32>
    %108 = arith.select %105, %106, %107 : vector<1x8x128xi1>, vector<1x8x128xf32>
    %109 = arith.addf %103, %108 : vector<1x8x128xf32>
    %c3_i32 = arith.constant 3 : i32
    %110 = vector.broadcast %c3_i32 : i32 to vector<1x8x128xi32>
    %111 = arith.cmpi eq, %92, %110 : vector<1x8x128xi32>
    %cst_33 = arith.constant 0.000000e+00 : f32
    %112 = vector.broadcast %91 : f32 to vector<1x8x128xf32>
    %113 = vector.broadcast %cst_33 : f32 to vector<1x8x128xf32>
    %114 = arith.select %111, %112, %113 : vector<1x8x128xi1>, vector<1x8x128xf32>
    %115 = arith.addf %109, %114 : vector<1x8x128xf32>
    %c0_34 = arith.constant 0 : index
    %c0_35 = arith.constant 0 : index
    %c0_36 = arith.constant 0 : index
    %116 = vector.load %arg3[%c0_34, %c0_35, %c0_36] : memref<1x8x128xf32, #tpu.memory_space<vmem>>, vector<1x8x128xf32>
    tpu.vector_store %arg3[%c0_34, %c0_35, %c0_36], %115 {strides = array<i32>} : memref<1x8x128xf32, #tpu.memory_space<vmem>>, vector<1x8x128xf32>,
    return
  }
  func.func @transform_0(%arg0: i32) -> (i32, i32) {
    %c0_i32 = arith.constant 0 : i32
    %c0_i32_0 = arith.constant 0 : i32
    return %arg0, %c0_i32 : i32, i32
  }
  func.func @transform_1(%arg0: i32) -> (i32, i32) {
    %c0_i32 = arith.constant 0 : i32
    %c0_i32_0 = arith.constant 0 : i32
    %c0_i32_1 = arith.constant 0 : i32
    return %c0_i32, %c0_i32_0 : i32, i32
  }
  func.func @transform_2(%arg0: i32) -> (i32, i32, i32) {
    %c0_i32 = arith.constant 0 : i32
    %c0_i32_0 = arith.constant 0 : i32
    %c0_i32_1 = arith.constant 0 : i32
    return %arg0, %c0_i32, %c0_i32_0 : i32, i32, i32
  }
}

</mosaic_0001>

<bundles_post_ra>
// kernel: tpu_custom_call.1
= control target key start
LH: loop header
LB: loop body
LE: loop exit
PB: predicated region body
PF: predicated region fallthrough
CT: control target
= control target key end

     0   :  { %7 = vsyncpa [#allocation3], 0  ;;  %s813_s0 = inlined_call_operand.hbm [shape: bf16[16,128], index: 0, kind: input, shape index: {}]   ;;  %s814_s1 = inlined_call_operand.hbm [shape: bf16[16,128], index: 1, kind: input, shape index: {}]   ;;  %s815_s2 = inlined_call_operand.hbm [shape: f32[2,8,128], index: 2, kind: output, shape index: {}]  }
   0x1   :  { %9 = vsyncpa [#allocation3 + $0x1], 0 }
   0x2   :  { %10 = vsyncpa [#allocation6], 0 }
   0x3   :  { %11 = vsyncpa [#allocation4], 0 }
   0x4   :  { %13 = vsyncpa [#allocation4 + $0x1], 0  ;;  %s661_s9 = smov 0   ;;  %s663_s10 = smov 0  }
   0x5   :  { %s665_s11 = smov 0   ;;  %s667_s12 = smov 0  }
   0x6 LB: > { %s108_s15 = sshll.u32 %s814_s1, 4  ;;  %s685_s16 = sadd.s32 4294967295, %s640_s12   ;;  %s640_s12 = sphi %s667_s12, %s825_s12   ;;  %s636_s11 = sphi %s665_s11, %s824_s11   ;;  %s632_s10 = sphi %s663_s10, %s823_s10   ;;  %s628_s9 = sphi %s661_s9, %s822_s9   ;;  %s109_s15 = int_to_ptr.hbm [resolvable:$true] %s108_s15 }
   0x7   : > { %p417_p0 = scmp.ge.s32.totalorder %s640_s12, 1  ;;  %p40_p1 = scmp.eq.s32.totalorder %s685_s16, 0 }
   0x8   : > { %p97_p2 = scmp.lt.s32.totalorder %s640_s12, 3  ;;  %s642_s18 = smov [#allocation5]  }
   0x9   : > { %s110_s19 = sshll.u32 %s642_s18, 4  ;;  %s643_s20 = smov 64   ;;  %s111_s19 = int_to_ptr.vmem [resolvable:$true] %s110_s19 }
   0xa   : > { %p690_p3 = pnand %p417_p0, %p97_p2  ;;  %s644_s21 = smov 4  }
   0xb   : > { %s416_s22 = sadd.s32 4294967294, %s640_s12   ;;  %s701_s23 = sadd.s32 1, %s640_s12  }
   0xc   : > { %p452_p4 = pneg %p690_p3  ;;  %s26_s24 = sadd.s32 1, %s636_s11 }
   0xd   : > { %s23_s25 = ssub.s32 %s640_s12, %s701_s23  ;;  %p33_p7 = scmp.ne.s32.totalorder %s636_s11, %s632_s10 }
   0xe   : > { %p453_p6 = pnand %p452_p4, %p40_p1  ;;  %p24_p8 = scmp.eq.s32.totalorder %s23_s25, 0 }
   0xf   : > { %p34_p9 = scmp.eq.s32.totalorder %s640_s12, 0  ;;  %p39_p10 = scmp.ne.s32.totalorder %s632_s10, %s628_s9 }
  0x10   : > { %455 = dma.hbm_to_vmem [thread:$0]  (!%p453_p6), %s109_s15, 128, %s111_s19, [#allocation6], %s643_s20, %s643_s20, %s644_s21  }
  0x11   : > { %p84_p11 = scmp.eq.s32.totalorder %s685_s16, 1  ;;  %p717_p12 = por %p40_p1, %p39_p10 }
  0x12   : > { %s713_s26 = scalar_select %p24_p8, %s636_s11, %s26_s24  }
  0x13   : > { %p721_p13 = por %p84_p11, %p33_p7  ;;  %p90_p0 = scmp.eq.s32.totalorder %s416_s22, 1 }
  0x14   : > { %p35_p2 = por %p34_p9, %p33_p7  ;;  %s124_s29 = sand.u32 1, %s636_s11  }
  0x15   : > { %p726_p4 = por %p90_p0, %p39_p10  ;;  %p465_p6 = scmp.lt.s32.totalorder %s640_s12, 2 }
  0x16   : > { %s420_s3 = sshll.u32 %s124_s29, 2  ;;  %s421_s4 = sshll.u32 %s640_s12, 2 }
  0x17   : > { %s132_s7 = scalar_lea.hbm %s813_s0, %s421_s4  ;;  %s128_s13 = scalar_lea.vmem [#allocation2], %s420_s3 }
  0x18   : > { %s134_s8 = sshll.u32 %s132_s7, 4  ;;  %s136_s14 = sshll.u32 %s128_s13, 4  ;;  %s135_s8 = int_to_ptr.hbm [resolvable:$true] %s134_s8  ;;  %s137_s14 = int_to_ptr.vmem [resolvable:$true] %s136_s14 }
  0x19   : > { %p735_p8 = pnand %p465_p6, %p35_p2  ;;  %s125_s18 = scalar_lea.sflag [#allocation3], %s124_s29 }
  0x1a   : > { %s540_s19 = sshra.s32 %s135_s8, 4  ;;  %s547_s24 = scalar_lea.hbm %s813_s0, 8  ;;  %s541_s19 = int_to_ptr.hbm [resolvable:$true] %s540_s19 }
  0x1b   : > { %s542_s20 = scalar_lea.hbm %s541_s19, 4  ;;  %p544_p9 = pneg %p735_p8 }
  0x1c   : > { %p543_p7 = scmp.ne.s32.totalorder %s541_s19, %s542_s20  ;;  %p548_p0 = scmp.lt.s32.totalorder %s541_s19, %s813_s0 }
  0x1d   : > { %p549_p2 = scmp.lt.s32.totalorder %s547_s24, %s542_s20 }
  0x1e   : > { %p545_p10 = pnand %p544_p9, %p543_p7 }
  0x1f   : > { %p550_p6 = por %p549_p2, %p548_p0 }
  0x20   : > { %p546_p11 = pneg %p545_p10 }
  0x22   : > { %p551_p5 = pnand %p550_p6, %p546_p11 }
  0x24   : > { %554 = shalt.err (!%p551_p5)
}
  0x25   : > { %459 = dma.hbm_to_vmem [thread:$0]  (!%p735_p8), %s135_s8, 64, %s137_s14, %s125_s18  }
  0x26   : > { %145 = sbr.rel (%p690_p3) target bundleno = 634 (0x27a), region = 28  ;;  %s752_s29 = sand.u32 (!%p690_p3), 1, %s632_s10  }
  0x27   : > { %s423_s4 = sshll.u32 (!%p690_p3), %s752_s29, 2  ;;  %s148_s5 = scalar_lea.sflag (!%p690_p3), [#allocation3], %s752_s29 }
  0x28   : > { %s151_s6 = scalar_lea.vmem (!%p690_p3), [#allocation2], %s423_s4 }
  0x2b   : > { %615 = dma.done.wait (%p717_p12), %s148_s5, 64  }
  0x2c   : > { %617 = vsyncadd (%p717_p12), %s148_s5, 4294967232 }
  0x2d   : > { %619 = dma.done.wait (%p40_p1), [#allocation6], 128  }
  0x2e   : > { %621 = vsyncadd (%p40_p1), [#allocation6], 4294967168  ;;  %v435_v0 = vld [vmem:[#allocation5] sm:$0xff]  ;;  %v179_v1 = vld [vmem:[%s151_s6] sm:$0xf]  ;;  %v205_v5 = vlaneseq  ;;  %s430_s17 = sshll.u32 %s685_s16, 3 }
  0x2f   : > { %v180_v2 = vunpack.c.l.bf16 %v179_v1  ;;  %198 = vmatpush.bf16.xpose.msra.mxu0 %v435_v0  ;;  %v207_v7 = vstv %s430_s17  ;;  %vm226_vm4 = vcmask 130048   ;;  %v645_v29 = vmov 0.0   ;;  %s425_s8 = sshll.u32 %s752_s29, 3  ;;  %s331_s18 = scalar_lea.hbm %s815_s2, %s430_s17 }
  0x30   : > { %v206_v6 = vshrl.u32 %v205_v5, 7  ;;  %v767_v18 = vand.u32 127, %v205_v5  ;;  %vm259_vm10 = vcmask 7168   ;;  %s177_s19 = scalar_lea.vmem [#allocation7], %s425_s8  ;;  %s335_s22 = sshll.u32 %s331_s18, 4  ;;  %s336_s22 = int_to_ptr.hbm [resolvable:$true] %s335_s22 }
  0x31   : > { %v181_v3 = vmul.f32 2.0, %v180_v2  ;;  %s333_s20 = sshll.u32 %s177_s19, 4  ;;  %s321_s16 = scalar_lea.sflag [#allocation4], %s752_s29  ;;  %s334_s20 = int_to_ptr.vmem [resolvable:$true] %s333_s20 }
  0x32   : > { %v208_v10 = vadd.s32 %v207_v7, %v206_v6  ;;  %vm304_vm11 = vcmp.eq.s32.totalorder %v767_v18, 0  ;;  %vm307_vm12 = vcmp.eq.s32.totalorder %v767_v18, 1  ;;  %vm311_vm13 = vcmp.eq.s32.totalorder %v767_v18, 2  ;;  %s584_s24 = sshra.s32 %s336_s22, 4  ;;  %s590_s5 = scalar_lea.hbm %s815_s2, 16  ;;  %s585_s24 = int_to_ptr.hbm [resolvable:$true] %s584_s24 }
  0x33   : > { %v182_v4 = vpack.c.bf16 %v181_v3, %v181_v3  ;;  %vm315_vm14 = vcmp.eq.s32.totalorder %v767_v18, 3  ;;  %s586_s25 = scalar_lea.hbm %s585_s24, 8  ;;  %p591_p12 = scmp.lt.s32.totalorder %s585_s24, %s815_s2 }
  0x34   : > { %v211_v11 = vadd.s32 8, %v208_v10  ;;  %p587_p1 = scmp.ne.s32.totalorder %s585_s24, %s586_s25  ;;  %p592_p8 = scmp.lt.s32.totalorder %s590_s5, %s586_s25 }
  0x35   : > { %v230_v8 = vunpack.c.l.bf16 %v182_v4 }
  0x36   : > { %199 = vmatmul.bf16.vlgmr.msra.gmra.mxu0 %v182_v4  ;;  %v213_v12 = vsub.s32 0, %v211_v11  ;;  %vm212_vm0 = vcmp.lt.s32.totalorder %v211_v11, 0  ;;  %p588_p3 = pnand %p587_p1, %p721_p13  ;;  %p593_p7 = por %p592_p8, %p591_p12 }
  0x37   : > { %v231_v9 = vmul.f32 %v230_v8, %v180_v2 }
  0x38   : > { %v214_v13 = vsel %vm212_vm0, %v213_v12, %v211_v11  ;;  %p589_p5 = pneg %p588_p3 }
  0x39   : > { %232 = vadd.xlane.f32.xlu1 %v231_v9  ;;  %v216_v14 = vand.u32 15, %v214_v13 }
  0x3a   : > { %p594_p9 = pnand %p593_p7, %p589_p5 }
  0x3b   : > { %v217_v15 = vsub.s32 0, %v216_v14 }
  0x3d   : > { %v218_v16 = vsel %vm212_vm0, %v217_v15, %v216_v14 }
  0x3e   : > { %vm219_vm1 = vcmp.ne.s32.totalorder %v218_v16, 0  ;;  %vm220_vm2 = vcmp.lt.s32.totalorder %v218_v16, 0  ;;  %v222_v17 = vadd.s32 16, %v218_v16 }
  0x3f   : > { %vm221_vm3 = vmand %vm220_vm2, %vm219_vm1 }
  0x40   : > { %v223_v20 = vsel %vm221_vm3, %v222_v17, %v218_v16 }
  0x41   : > { %vm224_vm5 = vcmp.eq.s32.totalorder %v767_v18, %v223_v20 }
  0xac   : > { %v233_v34 = vpop.xlane.xlu1 %232 }
  0xb3   : > { %v200_v19 = vpop.f32.mrf.mxu0 }
  0xb4   : > { %v234_v21 = vsel %vm226_vm4, %v200_v19, -inf  ;;  %v225_v22 = vsel %vm224_vm5, %v200_v19, 0.0 }
  0xb5   : > { %235 = vmax.xlane.f32.xlu0 %v234_v21  ;;  %v227_v24 = vsel %vm226_vm4, %v225_v22, 0.0 }
  0xbb   : > { %v202_v23 = vpop.f32.mrf.mxu0 }
  0xbd   : > { %228 = vadd.xlane.f32.xlu0 %v227_v24 }
 0x128   : > { %v236_v25 = vpop.xlane.xlu0 %235 }
 0x129   : > { %v237_v26 = vsub.f32 %v200_v19, %v236_v25  ;;  %v243_v35 = vsub.f32 %v233_v34, %v236_v25 }
 0x12b   : > { %v238_v27 = vmul.f32 1.442695, %v237_v26  ;;  %v244_v36 = vmul.f32 1.442695, %v243_v35 }
 0x12d   : > { %504 = vpow2.f32 %v238_v27 }
 0x12e   : > { %506 = vpow2.f32 %v244_v36 }
 0x130   : > { %v229_v28 = vpop.xlane.xlu0 %228 }
 0x131   : > { %vm251_vm6 = vcmp.gt.f32.partialorder %v200_v19, %v229_v28  ;;  %vm256_vm7 = vcmp.gt.f32.partialorder %v233_v34, %v229_v28 }
 0x132   : > { %v252_v30 = vsel %vm251_vm6, 1.0, %v645_v29  ;;  %v257_v37 = vsel %vm256_vm7, 1.0, %v645_v29 }
 0x133   : > { %v505_v31 = vpop.eup %504  ;;  %v253_v32 = vsel %vm226_vm4, %v252_v30, 0.0 }
 0x134   : > { %254 = vadd.xlane.f32.xlu2 %v253_v32  ;;  %v240_v33 = vsel %vm226_vm4, %v505_v31, 0.0  ;;  %v507_v39 = vpop.eup %506 }
 0x135   : > { %241 = vadd.xlane.f32.xlu1 %v240_v33 }
 0x1a7   : > { %v255_v38 = vpop.xlane.xlu2 %254 }
 0x1a8   : > { %v258_v40 = vsub.f32 %v255_v38, %v257_v37  ;;  %v242_v41 = vpop.xlane.xlu1 %241 }
 0x1a9   : > { %v246_v42 = vsub.f32 %v242_v41, %v507_v39 }
 0x1aa   : > { %vm282_vm8 = vcmp.lt.f32.partialorder %v258_v40, 5.0  ;;  %vm270_vm9 = vcmp.eq.f32.partialorder %v258_v40, 0.0  ;;  %v294_v52 = vsel %vm259_vm10, %v258_v40, 0.0 }
 0x1ab   : > { %508 = vlog2.f32 %v246_v42  ;;  %v283_v43 = vsel %vm282_vm8, 1.0, %v645_v29  ;;  %v271_v44 = vsel %vm270_vm9, 1.0, %v645_v29 }
 0x1ac   : > { %v284_v45 = vsel %vm259_vm10, %v283_v43, 0.0  ;;  %v272_v46 = vsel %vm259_vm10, %v271_v44, 0.0 }
 0x1ad   : > { %285 = vadd.xlane.f32.xlu1 %v284_v45  ;;  %273 = vadd.xlane.f32.xlu0 %v272_v46 }
 0x1b1   : > { %v509_v47 = vpop.eup %508 }
 0x1b2   : > { %v248_v48 = vmul.f32 0.6931472, %v509_v47 }
 0x1b4   : > { %v249_v49 = vadd.f32 %v248_v48, %v236_v25 }
 0x1b6   : > { %v250_v50 = vsub.f32 %v249_v49, %v229_v28 }
 0x1b8   : > { %v260_v51 = vsel %vm259_vm10, %v250_v50, 0.0 }
 0x1b9   : > { %261 = vadd.xlane.f32.xlu2 %v260_v51 }
 0x1c1   : > { %295 = vadd.xlane.f32.xlu2 %v294_v52 }
 0x220   : > { %v274_v53 = vpop.xlane.xlu0 %273  ;;  %v286_v54 = vpop.xlane.xlu1 %285 }
 0x221   : > { %v275_v55 = vrot.slane %v274_v53, 4  ;;  %v287_v56 = vrot.slane %v286_v54, 4 }
 0x223   : > { %v276_v57 = vadd.f32 %v275_v55, %v274_v53  ;;  %v288_v58 = vadd.f32 %v287_v56, %v286_v54 }
 0x225   : > { %v277_v59 = vrot.slane %v276_v57, 2  ;;  %v289_v61 = vrot.slane %v288_v58, 2 }
 0x227   : > { %v278_v0 = vadd.f32 %v277_v59, %v276_v57  ;;  %v290_v1 = vadd.f32 %v289_v61, %v288_v58 }
 0x229   : > { %v279_v5 = vrot.slane %v278_v0, 1  ;;  %v291_v8 = vrot.slane %v290_v1, 1 }
 0x22b   : > { %v280_v11 = vadd.f32 %v279_v5, %v278_v0  ;;  %v292_v13 = vadd.f32 %v291_v8, %v290_v1 }
 0x22c   : > { %v262_v60 = vpop.xlane.xlu2 %261 }
 0x22d   : > { %v263_v62 = vrot.slane %v262_v60, 4 }
 0x22f   : > { %v264_v63 = vadd.f32 %v263_v62, %v262_v60 }
 0x231   : > { %v265_v2 = vrot.slane %v264_v63, 2 }
 0x233   : > { %v266_v3 = vadd.f32 %v265_v2, %v264_v63 }
 0x234   : > { %v296_v4 = vpop.xlane.xlu2 %295 }
 0x235   : > { %v297_v6 = vrot.slane %v296_v4, 4  ;;  %v267_v7 = vrot.slane %v266_v3, 1 }
 0x237   : > { %v298_v9 = vadd.f32 %v297_v6, %v296_v4  ;;  %v268_v10 = vadd.f32 %v267_v7, %v266_v3 }
 0x239   : > { %v299_v12 = vrot.slane %v298_v9, 2  ;;  %436 = vpush %v268_v10 }
 0x23a   : > { %438 = vpush %v280_v11 }
 0x23b   : > { %v300_v14 = vadd.f32 %v299_v12, %v298_v9  ;;  %440 = vpush %v292_v13 }
 0x23d   : > { %v301_v15 = vrot.slane %v300_v14, 1 }
 0x23f   : > { %v302_v16 = vadd.f32 %v301_v15, %v300_v14 }
 0x241   : > { %442 = vpush %v302_v16 }
 0x26a   : > { %s437_s27 = spop %436 }
 0x26b   : > { %v305_v17 = vstv %s437_s27  ;;  %s439_s7 = spop %438 }
 0x26c   : > { %v306_v19 = vsel %vm304_vm11, %v305_v17, 0.0  ;;  %v308_v20 = vstv %s439_s7  ;;  %s441_s13 = spop %440 }
 0x26d   : > { %v309_v21 = vsel %vm307_vm12, %v308_v20, 0.0  ;;  %v312_v23 = vstv %s441_s13 }
 0x26e   : > { %v310_v22 = vadd.f32 %v309_v21, %v306_v19  ;;  %v313_v24 = vsel %vm311_vm13, %v312_v23, 0.0 }
 0x270   : > { %v314_v25 = vadd.f32 %v313_v24, %v310_v22 }
 0x272   : > { %s443_s21 = spop %442 }
 0x273   : > { %v316_v26 = vstv %s443_s21 }
 0x274   : > { %v317_v27 = vsel %vm315_vm14, %v316_v26, 0.0 }
 0x275   : > { %v318_v28 = vadd.f32 %v317_v27, %v314_v25 }
 0x277   : > { %319 = vst [vmem:[%s177_s19] sm:$0xff] %v318_v28 }
 0x278   : > { %597 = shalt.err (!%p594_p9)
}
 0x279   : > { %450 = dma.vmem_to_hbm [thread:$0]  (%p721_p13), %s334_s20, 128, %s336_s22, %s321_s16  }
 0x27a PF: > { %s347_s29 = sand.u32 1, %s628_s9   ;;  %p821_p10 = scmp.ge.s32.totalorder %s640_s12, 2 }
 0x27b   : > { %s348_s27 = scalar_lea.sflag [#allocation4], %s347_s29 }
 0x27c   : > { %p461_p11 = pnand %p821_p10, %p726_p4 }
 0x27e   : > { %p462_p0 = pneg %p461_p11 }
 0x280   : > { %623 = dma.done.wait (%p462_p0), %s348_s27, 128  }
 0x281   : > { %625 = vsyncadd (%p462_p0), %s348_s27, 4294967168  ;;  %p16_p2 = scmp.ge.s32.totalorder %s701_s23, 4   ;;  %s822_s9 = smov %s632_s10 }
 0x282   : > { %s823_s10 = smov %s636_s11  ;;  %s824_s11 = smov %s713_s26 }
 0x283   : > { %s825_s12 = smov %s701_s23  ;;  %18 = sbr.rel (!%p16_p2) target bundleno = 6 (0x6), region = 77 }
 0x288   :  { %354 = vsyncpa [#allocation3], 1 }
 0x289   :  { %356 = vsyncpa [#allocation3 + $0x1], 1 }
 0x28a   :  { %357 = vsyncpa [#allocation6], 1 }
 0x28b   :  { %358 = vsyncpa [#allocation4], 1 }
 0x28c   :  { %360 = vsyncpa [#allocation4 + $0x1], 1 }

// kernel: tpu_custom_call.1
= control target key start
LH: loop header
LB: loop body
LE: loop exit
PB: predicated region body
PF: predicated region fallthrough
CT: control target
= control target key end

     0   :  { %7 = vsyncpa [#allocation3], 0  ;;  %s813_s0 = inlined_call_operand.hbm [shape: bf16[16,128], index: 0, kind: input, shape index: {}]   ;;  %s814_s1 = inlined_call_operand.hbm [shape: bf16[16,128], index: 1, kind: input, shape index: {}]   ;;  %s815_s2 = inlined_call_operand.hbm [shape: f32[2,8,128], index: 2, kind: output, shape index: {}]  }
   0x1   :  { %9 = vsyncpa [#allocation3 + $0x1], 0 }
   0x2   :  { %10 = vsyncpa [#allocation6], 0 }
   0x3   :  { %11 = vsyncpa [#allocation4], 0 }
   0x4   :  { %13 = vsyncpa [#allocation4 + $0x1], 0  ;;  %s661_s9 = smov 0   ;;  %s663_s10 = smov 0  }
   0x5   :  { %s665_s11 = smov 0   ;;  %s667_s12 = smov 0  }
   0x6 LB: > { %s108_s15 = sshll.u32 %s814_s1, 4  ;;  %s685_s16 = sadd.s32 4294967295, %s640_s12   ;;  %s640_s12 = sphi %s667_s12, %s825_s12   ;;  %s636_s11 = sphi %s665_s11, %s824_s11   ;;  %s632_s10 = sphi %s663_s10, %s823_s10   ;;  %s628_s9 = sphi %s661_s9, %s822_s9   ;;  %s109_s15 = int_to_ptr.hbm [resolvable:$true] %s108_s15 }
   0x7   : > { %p417_p0 = scmp.ge.s32.totalorder %s640_s12, 1  ;;  %p40_p1 = scmp.eq.s32.totalorder %s685_s16, 0 }
   0x8   : > { %p97_p2 = scmp.lt.s32.totalorder %s640_s12, 3  ;;  %s642_s18 = smov [#allocation5]  }
   0x9   : > { %s110_s19 = sshll.u32 %s642_s18, 4  ;;  %s643_s20 = smov 64   ;;  %s111_s19 = int_to_ptr.vmem [resolvable:$true] %s110_s19 }
   0xa   : > { %p690_p3 = pnand %p417_p0, %p97_p2  ;;  %s644_s21 = smov 4  }
   0xb   : > { %s416_s22 = sadd.s32 4294967294, %s640_s12   ;;  %s701_s23 = sadd.s32 1, %s640_s12  }
   0xc   : > { %p452_p4 = pneg %p690_p3  ;;  %s26_s24 = sadd.s32 1, %s636_s11 }
   0xd   : > { %s23_s25 = ssub.s32 %s640_s12, %s701_s23  ;;  %p33_p7 = scmp.ne.s32.totalorder %s636_s11, %s632_s10 }
   0xe   : > { %p453_p6 = pnand %p452_p4, %p40_p1  ;;  %p24_p8 = scmp.eq.s32.totalorder %s23_s25, 0 }
   0xf   : > { %p34_p9 = scmp.eq.s32.totalorder %s640_s12, 0  ;;  %p39_p10 = scmp.ne.s32.totalorder %s632_s10, %s628_s9 }
  0x10   : > { %455 = dma.hbm_to_vmem [thread:$0]  (!%p453_p6), %s109_s15, 128, %s111_s19, [#allocation6], %s643_s20, %s643_s20, %s644_s21  }
  0x11   : > { %p84_p11 = scmp.eq.s32.totalorder %s685_s16, 1  ;;  %p717_p12 = por %p40_p1, %p39_p10 }
  0x12   : > { %s713_s26 = scalar_select %p24_p8, %s636_s11, %s26_s24  }
  0x13   : > { %p721_p13 = por %p84_p11, %p33_p7  ;;  %p90_p0 = scmp.eq.s32.totalorder %s416_s22, 1 }
  0x14   : > { %p35_p2 = por %p34_p9, %p33_p7  ;;  %s124_s29 = sand.u32 1, %s636_s11  }
  0x15   : > { %p726_p4 = por %p90_p0, %p39_p10  ;;  %p465_p6 = scmp.lt.s32.totalorder %s640_s12, 2 }
  0x16   : > { %s420_s3 = sshll.u32 %s124_s29, 2  ;;  %s421_s4 = sshll.u32 %s640_s12, 2 }
  0x17   : > { %s132_s7 = scalar_lea.hbm %s813_s0, %s421_s4  ;;  %s128_s13 = scalar_lea.vmem [#allocation2], %s420_s3 }
  0x18   : > { %s134_s8 = sshll.u32 %s132_s7, 4  ;;  %s136_s14 = sshll.u32 %s128_s13, 4  ;;  %s135_s8 = int_to_ptr.hbm [resolvable:$true] %s134_s8  ;;  %s137_s14 = int_to_ptr.vmem [resolvable:$true] %s136_s14 }
  0x19   : > { %p735_p8 = pnand %p465_p6, %p35_p2  ;;  %s125_s18 = scalar_lea.sflag [#allocation3], %s124_s29 }
  0x1a   : > { %s540_s19 = sshra.s32 %s135_s8, 4  ;;  %s547_s24 = scalar_lea.hbm %s813_s0, 8  ;;  %s541_s19 = int_to_ptr.hbm [resolvable:$true] %s540_s19 }
  0x1b   : > { %s542_s20 = scalar_lea.hbm %s541_s19, 4  ;;  %p544_p9 = pneg %p735_p8 }
  0x1c   : > { %p543_p7 = scmp.ne.s32.totalorder %s541_s19, %s542_s20  ;;  %p548_p0 = scmp.lt.s32.totalorder %s541_s19, %s813_s0 }
  0x1d   : > { %p549_p2 = scmp.lt.s32.totalorder %s547_s24, %s542_s20 }
  0x1e   : > { %p545_p10 = pnand %p544_p9, %p543_p7 }
  0x1f   : > { %p550_p6 = por %p549_p2, %p548_p0 }
  0x20   : > { %p546_p11 = pneg %p545_p10 }
  0x22   : > { %p551_p5 = pnand %p550_p6, %p546_p11 }
  0x24   : > { %554 = shalt.err (!%p551_p5)
}
  0x25   : > { %459 = dma.hbm_to_vmem [thread:$0]  (!%p735_p8), %s135_s8, 64, %s137_s14, %s125_s18  }
  0x26   : > { %145 = sbr.rel (%p690_p3) target bundleno = 634 (0x27a), region = 28  ;;  %s752_s29 = sand.u32 (!%p690_p3), 1, %s632_s10  }
  0x27   : > { %s423_s4 = sshll.u32 (!%p690_p3), %s752_s29, 2  ;;  %s148_s5 = scalar_lea.sflag (!%p690_p3), [#allocation3], %s752_s29 }
  0x28   : > { %s151_s6 = scalar_lea.vmem (!%p690_p3), [#allocation2], %s423_s4 }
  0x2b   : > { %615 = dma.done.wait (%p717_p12), %s148_s5, 64  }
  0x2c   : > { %617 = vsyncadd (%p717_p12), %s148_s5, 4294967232 }
  0x2d   : > { %619 = dma.done.wait (%p40_p1), [#allocation6], 128  }
  0x2e   : > { %621 = vsyncadd (%p40_p1), [#allocation6], 4294967168  ;;  %v435_v0 = vld [vmem:[#allocation5] sm:$0xff]  ;;  %v179_v1 = vld [vmem:[%s151_s6] sm:$0xf]  ;;  %v205_v5 = vlaneseq  ;;  %s430_s17 = sshll.u32 %s685_s16, 3 }
  0x2f   : > { %v180_v2 = vunpack.c.l.bf16 %v179_v1  ;;  %198 = vmatpush.bf16.xpose.msra.mxu0 %v435_v0  ;;  %v207_v7 = vstv %s430_s17  ;;  %vm226_vm4 = vcmask 130048   ;;  %v645_v29 = vmov 0.0   ;;  %s425_s8 = sshll.u32 %s752_s29, 3  ;;  %s331_s18 = scalar_lea.hbm %s815_s2, %s430_s17 }
  0x30   : > { %v206_v6 = vshrl.u32 %v205_v5, 7  ;;  %v767_v18 = vand.u32 127, %v205_v5  ;;  %vm259_vm10 = vcmask 7168   ;;  %s177_s19 = scalar_lea.vmem [#allocation7], %s425_s8  ;;  %s335_s22 = sshll.u32 %s331_s18, 4  ;;  %s336_s22 = int_to_ptr.hbm [resolvable:$true] %s335_s22 }
  0x31   : > { %v181_v3 = vmul.f32 2.0, %v180_v2  ;;  %s333_s20 = sshll.u32 %s177_s19, 4  ;;  %s321_s16 = scalar_lea.sflag [#allocation4], %s752_s29  ;;  %s334_s20 = int_to_ptr.vmem [resolvable:$true] %s333_s20 }
  0x32   : > { %v208_v10 = vadd.s32 %v207_v7, %v206_v6  ;;  %vm304_vm11 = vcmp.eq.s32.totalorder %v767_v18, 0  ;;  %vm307_vm12 = vcmp.eq.s32.totalorder %v767_v18, 1  ;;  %vm311_vm13 = vcmp.eq.s32.totalorder %v767_v18, 2  ;;  %s584_s24 = sshra.s32 %s336_s22, 4  ;;  %s590_s5 = scalar_lea.hbm %s815_s2, 16  ;;  %s585_s24 = int_to_ptr.hbm [resolvable:$true] %s584_s24 }
  0x33   : > { %v182_v4 = vpack.c.bf16 %v181_v3, %v181_v3  ;;  %vm315_vm14 = vcmp.eq.s32.totalorder %v767_v18, 3  ;;  %s586_s25 = scalar_lea.hbm %s585_s24, 8  ;;  %p591_p12 = scmp.lt.s32.totalorder %s585_s24, %s815_s2 }
  0x34   : > { %v211_v11 = vadd.s32 8, %v208_v10  ;;  %p587_p1 = scmp.ne.s32.totalorder %s585_s24, %s586_s25  ;;  %p592_p8 = scmp.lt.s32.totalorder %s590_s5, %s586_s25 }
  0x35   : > { %v230_v8 = vunpack.c.l.bf16 %v182_v4 }
  0x36   : > { %199 = vmatmul.bf16.vlgmr.msra.gmra.mxu0 %v182_v4  ;;  %v213_v12 = vsub.s32 0, %v211_v11  ;;  %vm212_vm0 = vcmp.lt.s32.totalorder %v211_v11, 0  ;;  %p588_p3 = pnand %p587_p1, %p721_p13  ;;  %p593_p7 = por %p592_p8, %p591_p12 }
  0x37   : > { %v231_v9 = vmul.f32 %v230_v8, %v180_v2 }
  0x38   : > { %v214_v13 = vsel %vm212_vm0, %v213_v12, %v211_v11  ;;  %p589_p5 = pneg %p588_p3 }
  0x39   : > { %232 = vadd.xlane.f32.xlu1 %v231_v9  ;;  %v216_v14 = vand.u32 15, %v214_v13 }
  0x3a   : > { %p594_p9 = pnand %p593_p7, %p589_p5 }
  0x3b   : > { %v217_v15 = vsub.s32 0, %v216_v14 }
  0x3d   : > { %v218_v16 = vsel %vm212_vm0, %v217_v15, %v216_v14 }
  0x3e   : > { %vm219_vm1 = vcmp.ne.s32.totalorder %v218_v16, 0  ;;  %vm220_vm2 = vcmp.lt.s32.totalorder %v218_v16, 0  ;;  %v222_v17 = vadd.s32 16, %v218_v16 }
  0x3f   : > { %vm221_vm3 = vmand %vm220_vm2, %vm219_vm1 }
  0x40   : > { %v223_v20 = vsel %vm221_vm3, %v222_v17, %v218_v16 }
  0x41   : > { %vm224_vm5 = vcmp.eq.s32.totalorder %v767_v18, %v223_v20 }
  0xac   : > { %v233_v34 = vpop.xlane.xlu1 %232 }
  0xb3   : > { %v200_v19 = vpop.f32.mrf.mxu0 }
  0xb4   : > { %v234_v21 = vsel %vm226_vm4, %v200_v19, -inf  ;;  %v225_v22 = vsel %vm224_vm5, %v200_v19, 0.0 }
  0xb5   : > { %235 = vmax.xlane.f32.xlu0 %v234_v21  ;;  %v227_v24 = vsel %vm226_vm4, %v225_v22, 0.0 }
  0xbb   : > { %v202_v23 = vpop.f32.mrf.mxu0 }
  0xbd   : > { %228 = vadd.xlane.f32.xlu0 %v227_v24 }
 0x128   : > { %v236_v25 = vpop.xlane.xlu0 %235 }
 0x129   : > { %v237_v26 = vsub.f32 %v200_v19, %v236_v25  ;;  %v243_v35 = vsub.f32 %v233_v34, %v236_v25 }
 0x12b   : > { %v238_v27 = vmul.f32 1.442695, %v237_v26  ;;  %v244_v36 = vmul.f32 1.442695, %v243_v35 }
 0x12d   : > { %504 = vpow2.f32 %v238_v27 }
 0x12e   : > { %506 = vpow2.f32 %v244_v36 }
 0x130   : > { %v229_v28 = vpop.xlane.xlu0 %228 }
 0x131   : > { %vm251_vm6 = vcmp.gt.f32.partialorder %v200_v19, %v229_v28  ;;  %vm256_vm7 = vcmp.gt.f32.partialorder %v233_v34, %v229_v28 }
 0x132   : > { %v252_v30 = vsel %vm251_vm6, 1.0, %v645_v29  ;;  %v257_v37 = vsel %vm256_vm7, 1.0, %v645_v29 }
 0x133   : > { %v505_v31 = vpop.eup %504  ;;  %v253_v32 = vsel %vm226_vm4, %v252_v30, 0.0 }
 0x134   : > { %254 = vadd.xlane.f32.xlu2 %v253_v32  ;;  %v240_v33 = vsel %vm226_vm4, %v505_v31, 0.0  ;;  %v507_v39 = vpop.eup %506 }
 0x135   : > { %241 = vadd.xlane.f32.xlu1 %v240_v33 }
 0x1a7   : > { %v255_v38 = vpop.xlane.xlu2 %254 }
 0x1a8   : > { %v258_v40 = vsub.f32 %v255_v38, %v257_v37  ;;  %v242_v41 = vpop.xlane.xlu1 %241 }
 0x1a9   : > { %v246_v42 = vsub.f32 %v242_v41, %v507_v39 }
 0x1aa   : > { %vm282_vm8 = vcmp.lt.f32.partialorder %v258_v40, 5.0  ;;  %vm270_vm9 = vcmp.eq.f32.partialorder %v258_v40, 0.0  ;;  %v294_v52 = vsel %vm259_vm10, %v258_v40, 0.0 }
 0x1ab   : > { %508 = vlog2.f32 %v246_v42  ;;  %v283_v43 = vsel %vm282_vm8, 1.0, %v645_v29  ;;  %v271_v44 = vsel %vm270_vm9, 1.0, %v645_v29 }
 0x1ac   : > { %v284_v45 = vsel %vm259_vm10, %v283_v43, 0.0  ;;  %v272_v46 = vsel %vm259_vm10, %v271_v44, 0.0 }
 0x1ad   : > { %285 = vadd.xlane.f32.xlu1 %v284_v45  ;;  %273 = vadd.xlane.f32.xlu0 %v272_v46 }
 0x1b1   : > { %v509_v47 = vpop.eup %508 }
 0x1b2   : > { %v248_v48 = vmul.f32 0.6931472, %v509_v47 }
 0x1b4   : > { %v249_v49 = vadd.f32 %v248_v48, %v236_v25 }
 0x1b6   : > { %v250_v50 = vsub.f32 %v249_v49, %v229_v28 }
 0x1b8   : > { %v260_v51 = vsel %vm259_vm10, %v250_v50, 0.0 }
 0x1b9   : > { %261 = vadd.xlane.f32.xlu2 %v260_v51 }
 0x1c1   : > { %295 = vadd.xlane.f32.xlu2 %v294_v52 }
 0x220   : > { %v274_v53 = vpop.xlane.xlu0 %273  ;;  %v286_v54 = vpop.xlane.xlu1 %285 }
 0x221   : > { %v275_v55 = vrot.slane %v274_v53, 4  ;;  %v287_v56 = vrot.slane %v286_v54, 4 }
 0x223   : > { %v276_v57 = vadd.f32 %v275_v55, %v274_v53  ;;  %v288_v58 = vadd.f32 %v287_v56, %v286_v54 }
 0x225   : > { %v277_v59 = vrot.slane %v276_v57, 2  ;;  %v289_v61 = vrot.slane %v288_v58, 2 }
 0x227   : > { %v278_v0 = vadd.f32 %v277_v59, %v276_v57  ;;  %v290_v1 = vadd.f32 %v289_v61, %v288_v58 }
 0x229   : > { %v279_v5 = vrot.slane %v278_v0, 1  ;;  %v291_v8 = vrot.slane %v290_v1, 1 }
 0x22b   : > { %v280_v11 = vadd.f32 %v279_v5, %v278_v0  ;;  %v292_v13 = vadd.f32 %v291_v8, %v290_v1 }
 0x22c   : > { %v262_v60 = vpop.xlane.xlu2 %261 }
 0x22d   : > { %v263_v62 = vrot.slane %v262_v60, 4 }
 0x22f   : > { %v264_v63 = vadd.f32 %v263_v62, %v262_v60 }
 0x231   : > { %v265_v2 = vrot.slane %v264_v63, 2 }
 0x233   : > { %v266_v3 = vadd.f32 %v265_v2, %v264_v63 }
 0x234   : > { %v296_v4 = vpop.xlane.xlu2 %295 }
 0x235   : > { %v297_v6 = vrot.slane %v296_v4, 4  ;;  %v267_v7 = vrot.slane %v266_v3, 1 }
 0x237   : > { %v298_v9 = vadd.f32 %v297_v6, %v296_v4  ;;  %v268_v10 = vadd.f32 %v267_v7, %v266_v3 }
 0x239   : > { %v299_v12 = vrot.slane %v298_v9, 2  ;;  %436 = vpush %v268_v10 }
 0x23a   : > { %438 = vpush %v280_v11 }
 0x23b   : > { %v300_v14 = vadd.f32 %v299_v12, %v298_v9  ;;  %440 = vpush %v292_v13 }
 0x23d   : > { %v301_v15 = vrot.slane %v300_v14, 1 }
 0x23f   : > { %v302_v16 = vadd.f32 %v301_v15, %v300_v14 }
 0x241   : > { %442 = vpush %v302_v16 }
 0x26a   : > { %s437_s27 = spop %436 }
 0x26b   : > { %v305_v17 = vstv %s437_s27  ;;  %s439_s7 = spop %438 }
 0x26c   : > { %v306_v19 = vsel %vm304_vm11, %v305_v17, 0.0  ;;  %v308_v20 = vstv %s439_s7  ;;  %s441_s13 = spop %440 }
 0x26d   : > { %v309_v21 = vsel %vm307_vm12, %v308_v20, 0.0  ;;  %v312_v23 = vstv %s441_s13 }
 0x26e   : > { %v310_v22 = vadd.f32 %v309_v21, %v306_v19  ;;  %v313_v24 = vsel %vm311_vm13, %v312_v23, 0.0 }
 0x270   : > { %v314_v25 = vadd.f32 %v313_v24, %v310_v22 }
 0x272   : > { %s443_s21 = spop %442 }
 0x273   : > { %v316_v26 = vstv %s443_s21 }
 0x274   : > { %v317_v27 = vsel %vm315_vm14, %v316_v26, 0.0 }
 0x275   : > { %v318_v28 = vadd.f32 %v317_v27, %v314_v25 }
 0x277   : > { %319 = vst [vmem:[%s177_s19] sm:$0xff] %v318_v28 }
 0x278   : > { %597 = shalt.err (!%p594_p9)
}
 0x279   : > { %450 = dma.vmem_to_hbm [thread:$0]  (%p721_p13), %s334_s20, 128, %s336_s22, %s321_s16  }
 0x27a PF: > { %s347_s29 = sand.u32 1, %s628_s9   ;;  %p821_p10 = scmp.ge.s32.totalorder %s640_s12, 2 }
 0x27b   : > { %s348_s27 = scalar_lea.sflag [#allocation4], %s347_s29 }
 0x27c   : > { %p461_p11 = pnand %p821_p10, %p726_p4 }
 0x27e   : > { %p462_p0 = pneg %p461_p11 }
 0x280   : > { %623 = dma.done.wait (%p462_p0), %s348_s27, 128  }
 0x281   : > { %625 = vsyncadd (%p462_p0), %s348_s27, 4294967168  ;;  %p16_p2 = scmp.ge.s32.totalorder %s701_s23, 4   ;;  %s822_s9 = smov %s632_s10 }
 0x282   : > { %s823_s10 = smov %s636_s11  ;;  %s824_s11 = smov %s713_s26 }
 0x283   : > { %s825_s12 = smov %s701_s23  ;;  %18 = sbr.rel (!%p16_p2) target bundleno = 6 (0x6), region = 77 }
 0x288   :  { %354 = vsyncpa [#allocation3], 1 }
 0x289   :  { %356 = vsyncpa [#allocation3 + $0x1], 1 }
 0x28a   :  { %357 = vsyncpa [#allocation6], 1 }
 0x28b   :  { %358 = vsyncpa [#allocation4], 1 }
 0x28c   :  { %360 = vsyncpa [#allocation4 + $0x1], 1 }

</bundles_post_ra>
